<compile_context>
chip_gen: v6e
topology: v6e:2x2x1
jax: 0.10.0
libtpu: 0.0.40
codegen_flags: <defaults>
</compile_context>

<pallas_src>
import functools

import jax
import jax.numpy as jnp
from jax.experimental import pallas as pl
from jax.experimental.pallas import tpu as pltpu


def _snn_kernel(T, BP, N, x_ref, wpack_ref, ppack_ref, out_ref):
    """Fused SNN forward; single gridless invocation, everything in VMEM.

    x_ref:     (T*BP, 96)    time-major input, batch zero-padded to BP=8
    wpack_ref: (96+3N, N)    [w1; w2; w3; w4 (lane-padded to N)]
    ppack_ref: (11, N)       [b1,b2,b3,b4p, vth1,tau1, vth2,tau2, vth3,tau3, tau4p]
    out_ref:   (T*BP+BP,128) rows [0,T*BP): readout u4 (lanes 0..1 valid);
                             rows [T*BP,..): [c1|c2|c3]/T   (lanes 0..3N-1)
    """
    f32 = jnp.float32
    TB = T * BP
    F_IN = x_ref.shape[1]
    LANES = out_ref.shape[1]

    # ---- weights: ref-slices at sublane-aligned offsets (one packed DMA) ----
    w1 = wpack_ref[pl.ds(0, F_IN), :]
    w2 = wpack_ref[pl.ds(F_IN, N), :]
    w3 = wpack_ref[pl.ds(F_IN + N, N), :]
    w4 = wpack_ref[pl.ds(F_IN + 2 * N, N), :]          # lanes >= 2 are zero

    # ---- small params: one load, static row slices, hoisted broadcasts ----
    pp = ppack_ref[...]
    b1 = pp[0:1, :]
    b2 = pp[1:2, :]
    b3 = pp[2:3, :]
    b4 = pp[3:4, :]                                     # lanes >= 2 are zero
    vth1 = jnp.broadcast_to(pp[4:5, :], (BP, N))
    tau1 = jnp.broadcast_to(pp[5:6, :], (BP, N))
    vth2 = jnp.broadcast_to(pp[6:7, :], (BP, N))
    tau2 = jnp.broadcast_to(pp[7:8, :], (BP, N))
    vth3 = jnp.broadcast_to(pp[9:10, :] * 0 + pp[8:9, :], (BP, N))
    tau3 = jnp.broadcast_to(pp[9:10, :], (BP, N))
    tau4 = jnp.broadcast_to(pp[10:11, :], (BP, N))      # lanes >= 2 are zero

    def lif_scan(h_all, tau_b, vth_b):
        """Serial LIF scan over T; returns all spikes (TB, N) + spike count."""
        u = jnp.zeros((BP, N), f32)
        spiked = jnp.zeros((BP, N), jnp.bool_)
        c = jnp.zeros((BP, N), f32)
        spikes = []
        for t in range(T):
            h = h_all[t * BP:(t + 1) * BP, :]           # tile-aligned slice
            u = h + jnp.where(spiked, 0.0, tau_b * u)   # == tau*u*(1-o) + h
            spiked = u > vth_b
            o = spiked.astype(f32)
            c = c + o
            spikes.append(o)
        return jnp.concatenate(spikes, axis=0), c

    # ---- layer-by-layer: big batched matmuls, elementwise-only scans ----
    h1_all = jnp.dot(x_ref[...], w1, preferred_element_type=f32) + b1
    o1_all, c1 = lif_scan(h1_all, tau1, vth1)

    h2_all = jnp.dot(o1_all, w2, preferred_element_type=f32) + b2
    o2_all, c2 = lif_scan(h2_all, tau2, vth2)

    h3_all = jnp.dot(o2_all, w3, preferred_element_type=f32) + b3
    o3_all, c3 = lif_scan(h3_all, tau3, vth3)

    h4_all = jnp.dot(o3_all, w4, preferred_element_type=f32) + b4   # (TB, N)

    # ---- LI_no_Spike readout scan in registers, single store at the end ----
    u4 = jnp.zeros((BP, N), f32)
    outs = []
    for t in range(T):
        u4 = tau4 * u4 + h4_all[t * BP:(t + 1) * BP, :]
        outs.append(u4)
    u4_all = jnp.concatenate(outs, axis=0)                           # (TB, N)

    # ---- one lane-dense output slab, written once ----
    inv_t = f32(1.0 / T)
    readout = jnp.concatenate([u4_all, jnp.zeros((TB, LANES - N), f32)], axis=1)
    counts = jnp.concatenate(
        [c1 * inv_t, c2 * inv_t, c3 * inv_t,
         jnp.zeros((BP, LANES - 3 * N), f32)], axis=1)
    out_ref[...] = jnp.concatenate([readout, counts], axis=0)


def net_forward(x_bft, params):
    """x_bft: (B, 96, T) float32 -> (out (B,2,T), (sc1, sc2, sc3) each (B,N))."""
    B, F_in, T = x_bft.shape
    N = params["w1"].shape[1]
    BP = 8           # pad batch to one sublane tile
    LANES = 128
    assert B <= BP and 3 * N <= LANES

    # Time-major, batch zero-padded to BP; row index = t*BP + b.
    x_tbf = jnp.transpose(x_bft, (2, 0, 1)).astype(jnp.float32)      # (T,B,F)
    x_2d = jnp.pad(x_tbf, ((0, 0), (0, BP - B), (0, 0))).reshape(T * BP, F_in)

    def pad_lanes(v, n):
        return jnp.pad(v, ((0, 0), (0, n - v.shape[1])))

    # Pack all weights into one slab, all tiny (1,*) params into another.
    wpack = jnp.concatenate(
        [params["w1"], params["w2"], params["w3"], pad_lanes(params["w4"], N)],
        axis=0).astype(jnp.float32)                                  # (F+3N, N)
    ppack = jnp.concatenate(
        [params["b1"], params["b2"], params["b3"], pad_lanes(params["b4"], N),
         params["vth1"], params["tau1"],
         params["vth2"], params["tau2"],
         params["vth3"], params["tau3"],
         pad_lanes(params["tau4"], N)],
        axis=0).astype(jnp.float32)                                  # (11, N)

    vmem = pl.BlockSpec(memory_space=pltpu.MemorySpace.VMEM)
    out_rows = T * BP + BP
    f = pl.pallas_call(
        functools.partial(_snn_kernel, T, BP, N),
        out_shape=jax.ShapeDtypeStruct((out_rows, LANES), jnp.float32),
        in_specs=[vmem, vmem, vmem],
        out_specs=vmem,
    )
    slab = f(x_2d, wpack, ppack)

    u4 = slab[:T * BP, :2].reshape(T, BP, 2)[:, :B, :]               # (T,B,2)
    out_b2t = jnp.transpose(u4, (1, 2, 0))                           # (B,2,T)
    counts = slab[T * BP:T * BP + B, :3 * N]                         # (B,3N)
    sc1 = counts[:, :N]
    sc2 = counts[:, N:2 * N]
    sc3 = counts[:, 2 * N:3 * N]
    return out_b2t, (sc1, sc2, sc3)


def reference_forward(x_bft, p):
    """Pure-JAX reference of the same forward pass (for correctness checking)."""
    B, F_in, T = x_bft.shape
    N = p["w1"].shape[1]
    z = lambda n: jnp.zeros((B, n), jnp.float32)
    u1, o1, u2, o2, u3, o3 = z(N), z(N), z(N), z(N), z(N), z(N)
    u4 = z(2)
    c1, c2, c3 = z(N), z(N), z(N)
    outs = []
    for t in range(T):
        xt = x_bft[:, :, t]
        h1 = xt @ p["w1"] + p["b1"]
        u1 = p["tau1"] * u1 * (1.0 - o1) + h1
        o1 = (u1 > p["vth1"]).astype(jnp.float32)
        c1 = c1 + o1
        h2 = o1 @ p["w2"] + p["b2"]
        u2 = p["tau2"] * u2 * (1.0 - o2) + h2
        o2 = (u2 > p["vth2"]).astype(jnp.float32)
        c2 = c2 + o2
        h3 = o2 @ p["w3"] + p["b3"]
        u3 = p["tau3"] * u3 * (1.0 - o3) + h3
        o3 = (u3 > p["vth3"]).astype(jnp.float32)
        c3 = c3 + o3
        h4 = o3 @ p["w4"] + p["b4"]
        u4 = p["tau4"] * u4 + h4
        outs.append(u4)
    out = jnp.stack(outs, axis=-1)  # (B, 2, T)
    return out, (c1 / T, c2 / T, c3 / T)


def make_params(key, f_in=96, n=32, n_out=2):
    """Deterministic parameter init (PyTorch-Linear-style uniform fan-in init)."""
    ks = jax.random.split(key, 12)

    def linear(kw, kb, fan_in, fan_out):
        lim = float(fan_in) ** -0.5
        w = jax.random.uniform(kw, (fan_in, fan_out), jnp.float32, -lim, lim)
        b = jax.random.uniform(kb, (1, fan_out), jnp.float32, -lim, lim)
        return w, b

    w1, b1 = linear(ks[0], ks[1], f_in, n)
    w2, b2 = linear(ks[2], ks[3], n, n)
    w3, b3 = linear(ks[4], ks[5], n, n)
    w4, b4 = linear(ks[6], ks[7], n, n_out)
    params = dict(w1=w1, b1=b1, w2=w2, b2=b2, w3=w3, b3=b3, w4=w4, b4=b4)
    # Per-neuron learnable LIF parameters (Vth >= 0, 0 <= tau <= 1).
    params["vth1"] = 0.25 + 0.05 * jax.random.uniform(ks[8], (1, n), jnp.float32)
    params["vth2"] = 0.25 + 0.05 * jax.random.uniform(ks[9], (1, n), jnp.float32)
    params["vth3"] = 0.25 + 0.05 * jax.random.uniform(ks[10], (1, n), jnp.float32)
    params["tau1"] = jnp.full((1, n), 0.6, jnp.float32)
    params["tau2"] = jnp.full((1, n), 0.6, jnp.float32)
    params["tau3"] = jnp.full((1, n), 0.6, jnp.float32)
    params["tau4"] = jnp.full((1, n_out), 0.8, jnp.float32)
    return params


if __name__ == "__main__":
    B, F_IN, T, N = 2, 96, 8, 32  # batch, input feats, time steps, neuron_count

    key = jax.random.PRNGKey(0)
    k_params, k_x = jax.random.split(key)
    params = make_params(k_params, f_in=F_IN, n=N, n_out=2)
    x = jax.random.normal(k_x, (B, F_IN, T), jnp.float32)  # PyTorch-style (B, F, T)

    out, (sc1, sc2, sc3) = net_forward(x, params)
    jax.block_until_ready(out)
    jax.block_until_ready(sc1)

    ref_out, (r1, r2, r3) = reference_forward(x, params)

    assert out.shape == (B, 2, T) and sc1.shape == (B, N)
    assert jnp.allclose(out, ref_out, rtol=1e-3, atol=1e-3), "readout mismatch"
    assert jnp.allclose(sc1, r1, atol=1e-5), "spikeCount1 mismatch"
    assert jnp.allclose(sc2, r2, atol=1e-5), "spikeCount2 mismatch"
    assert jnp.allclose(sc3, r3, atol=1e-5), "spikeCount3 mismatch"

    print("KERNEL_OK")
</pallas_src>

<mosaic_0001>
module attributes {stable_mosaic.version = 11 : i64} {
  func.func @_snn_kernel(%arg0: memref<64x96xf32, #tpu.memory_space<vmem>>, %arg1: memref<192x32xf32, #tpu.memory_space<vmem>>, %arg2: memref<11x32xf32, #tpu.memory_space<vmem>>, %arg3: memref<72x128xf32, #tpu.memory_space<vmem>>) attributes {dimension_semantics = [], scalar_prefetch = 0 : i64, scratch_operands = 0 : i64, tpu.core_type = #tpu.core_type<tc>} {
    %c0 = arith.constant 0 : index
    %c0_0 = arith.constant 0 : index
    %0 = vector.load %arg1[%c0, %c0_0] : memref<192x32xf32, #tpu.memory_space<vmem>>, vector<96x32xf32>
    %c96 = arith.constant 96 : index
    %c0_1 = arith.constant 0 : index
    %1 = vector.load %arg1[%c96, %c0_1] : memref<192x32xf32, #tpu.memory_space<vmem>>, vector<32x32xf32>
    %c128 = arith.constant 128 : index
    %c0_2 = arith.constant 0 : index
    %2 = vector.load %arg1[%c128, %c0_2] : memref<192x32xf32, #tpu.memory_space<vmem>>, vector<32x32xf32>
    %c160 = arith.constant 160 : index
    %c0_3 = arith.constant 0 : index
    %3 = vector.load %arg1[%c160, %c0_3] : memref<192x32xf32, #tpu.memory_space<vmem>>, vector<32x32xf32>
    %c0_4 = arith.constant 0 : index
    %c0_5 = arith.constant 0 : index
    %4 = vector.load %arg2[%c0_4, %c0_5] : memref<11x32xf32, #tpu.memory_space<vmem>>, vector<11x32xf32>
    %5 = vector.extract_strided_slice %4 {offsets = [0, 0], sizes = [1, 32], strides = [1, 1]} : vector<11x32xf32> to vector<1x32xf32>
    %6 = vector.extract_strided_slice %4 {offsets = [1, 0], sizes = [1, 32], strides = [1, 1]} : vector<11x32xf32> to vector<1x32xf32>
    %7 = vector.extract_strided_slice %4 {offsets = [2, 0], sizes = [1, 32], strides = [1, 1]} : vector<11x32xf32> to vector<1x32xf32>
    %8 = vector.extract_strided_slice %4 {offsets = [3, 0], sizes = [1, 32], strides = [1, 1]} : vector<11x32xf32> to vector<1x32xf32>
    %9 = vector.extract_strided_slice %4 {offsets = [4, 0], sizes = [1, 32], strides = [1, 1]} : vector<11x32xf32> to vector<1x32xf32>
    %10 = vector.shape_cast %9 : vector<1x32xf32> to vector<1x32xf32>
    %11 = vector.broadcast %10 : vector<1x32xf32> to vector<8x32xf32>
    %12 = vector.extract_strided_slice %4 {offsets = [5, 0], sizes = [1, 32], strides = [1, 1]} : vector<11x32xf32> to vector<1x32xf32>
    %13 = vector.shape_cast %12 : vector<1x32xf32> to vector<1x32xf32>
    %14 = vector.broadcast %13 : vector<1x32xf32> to vector<8x32xf32>
    %15 = vector.extract_strided_slice %4 {offsets = [6, 0], sizes = [1, 32], strides = [1, 1]} : vector<11x32xf32> to vector<1x32xf32>
    %16 = vector.shape_cast %15 : vector<1x32xf32> to vector<1x32xf32>
    %17 = vector.broadcast %16 : vector<1x32xf32> to vector<8x32xf32>
    %18 = vector.extract_strided_slice %4 {offsets = [7, 0], sizes = [1, 32], strides = [1, 1]} : vector<11x32xf32> to vector<1x32xf32>
    %19 = vector.shape_cast %18 : vector<1x32xf32> to vector<1x32xf32>
    %20 = vector.broadcast %19 : vector<1x32xf32> to vector<8x32xf32>
    %21 = vector.extract_strided_slice %4 {offsets = [9, 0], sizes = [1, 32], strides = [1, 1]} : vector<11x32xf32> to vector<1x32xf32>
    %cst = arith.constant 0.000000e+00 : f32
    %22 = vector.broadcast %cst : f32 to vector<1x32xf32>
    %23 = arith.mulf %21, %22 : vector<1x32xf32>
    %24 = vector.extract_strided_slice %4 {offsets = [8, 0], sizes = [1, 32], strides = [1, 1]} : vector<11x32xf32> to vector<1x32xf32>
    %25 = arith.addf %23, %24 : vector<1x32xf32>
    %26 = vector.shape_cast %25 : vector<1x32xf32> to vector<1x32xf32>
    %27 = vector.broadcast %26 : vector<1x32xf32> to vector<8x32xf32>
    %28 = vector.extract_strided_slice %4 {offsets = [9, 0], sizes = [1, 32], strides = [1, 1]} : vector<11x32xf32> to vector<1x32xf32>
    %29 = vector.shape_cast %28 : vector<1x32xf32> to vector<1x32xf32>
    %30 = vector.broadcast %29 : vector<1x32xf32> to vector<8x32xf32>
    %31 = vector.extract_strided_slice %4 {offsets = [10, 0], sizes = [1, 32], strides = [1, 1]} : vector<11x32xf32> to vector<1x32xf32>
    %32 = vector.shape_cast %31 : vector<1x32xf32> to vector<1x32xf32>
    %33 = vector.broadcast %32 : vector<1x32xf32> to vector<8x32xf32>
    %c0_6 = arith.constant 0 : index
    %c0_7 = arith.constant 0 : index
    %34 = vector.load %arg0[%c0_6, %c0_7] : memref<64x96xf32, #tpu.memory_space<vmem>>, vector<64x96xf32>
    %cst_8 = arith.constant dense<0.000000e+00> : vector<64x32xf32>
    %35 = tpu.matmul %34, %0, %cst_8 {dimension_numbers = #tpu.dot_dimension_numbers<[1], [0], [0], [1], [0, 0, 1, 1], [], []>} : vector<64x96xf32>, vector<96x32xf32>, vector<64x32xf32> -> vector<64x32xf32>
    %36 = vector.broadcast %5 : vector<1x32xf32> to vector<64x32xf32>
    %37 = arith.addf %35, %36 : vector<64x32xf32>
    %cst_9 = arith.constant 0.000000e+00 : f32
    %38 = vector.broadcast %cst_9 : f32 to vector<8x32xf32>
    %false = arith.constant false
    %39 = vector.broadcast %false : i1 to vector<8x32xi1>
    %cst_10 = arith.constant 0.000000e+00 : f32
    %40 = vector.broadcast %cst_10 : f32 to vector<8x32xf32>
    %41 = vector.extract_strided_slice %37 {offsets = [0, 0], sizes = [8, 32], strides = [1, 1]} : vector<64x32xf32> to vector<8x32xf32>
    %42 = arith.mulf %14, %38 : vector<8x32xf32>
    %cst_11 = arith.constant 0.000000e+00 : f32
    %43 = vector.broadcast %cst_11 : f32 to vector<8x32xf32>
    %44 = arith.select %39, %43, %42 : vector<8x32xi1>, vector<8x32xf32>
    %45 = arith.addf %41, %44 : vector<8x32xf32>
    %46 = arith.cmpf ogt, %45, %11 : vector<8x32xf32>
    %47 = arith.extui %46 : vector<8x32xi1> to vector<8x32xi32>
    %48 = arith.sitofp %47 : vector<8x32xi32> to vector<8x32xf32>
    %49 = arith.addf %40, %48 : vector<8x32xf32>
    %50 = vector.extract_strided_slice %37 {offsets = [8, 0], sizes = [8, 32], strides = [1, 1]} : vector<64x32xf32> to vector<8x32xf32>
    %51 = arith.mulf %14, %45 : vector<8x32xf32>
    %cst_12 = arith.constant 0.000000e+00 : f32
    %52 = vector.broadcast %cst_12 : f32 to vector<8x32xf32>
    %53 = arith.select %46, %52, %51 : vector<8x32xi1>, vector<8x32xf32>
    %54 = arith.addf %50, %53 : vector<8x32xf32>
    %55 = arith.cmpf ogt, %54, %11 : vector<8x32xf32>
    %56 = arith.extui %55 : vector<8x32xi1> to vector<8x32xi32>
    %57 = arith.sitofp %56 : vector<8x32xi32> to vector<8x32xf32>
    %58 = arith.addf %49, %57 : vector<8x32xf32>
    %59 = vector.extract_strided_slice %37 {offsets = [16, 0], sizes = [8, 32], strides = [1, 1]} : vector<64x32xf32> to vector<8x32xf32>
    %60 = arith.mulf %14, %54 : vector<8x32xf32>
    %cst_13 = arith.constant 0.000000e+00 : f32
    %61 = vector.broadcast %cst_13 : f32 to vector<8x32xf32>
    %62 = arith.select %55, %61, %60 : vector<8x32xi1>, vector<8x32xf32>
    %63 = arith.addf %59, %62 : vector<8x32xf32>
    %64 = arith.cmpf ogt, %63, %11 : vector<8x32xf32>
    %65 = arith.extui %64 : vector<8x32xi1> to vector<8x32xi32>
    %66 = arith.sitofp %65 : vector<8x32xi32> to vector<8x32xf32>
    %67 = arith.addf %58, %66 : vector<8x32xf32>
    %68 = vector.extract_strided_slice %37 {offsets = [24, 0], sizes = [8, 32], strides = [1, 1]} : vector<64x32xf32> to vector<8x32xf32>
    %69 = arith.mulf %14, %63 : vector<8x32xf32>
    %cst_14 = arith.constant 0.000000e+00 : f32
    %70 = vector.broadcast %cst_14 : f32 to vector<8x32xf32>
    %71 = arith.select %64, %70, %69 : vector<8x32xi1>, vector<8x32xf32>
    %72 = arith.addf %68, %71 : vector<8x32xf32>
    %73 = arith.cmpf ogt, %72, %11 : vector<8x32xf32>
    %74 = arith.extui %73 : vector<8x32xi1> to vector<8x32xi32>
    %75 = arith.sitofp %74 : vector<8x32xi32> to vector<8x32xf32>
    %76 = arith.addf %67, %75 : vector<8x32xf32>
    %77 = vector.extract_strided_slice %37 {offsets = [32, 0], sizes = [8, 32], strides = [1, 1]} : vector<64x32xf32> to vector<8x32xf32>
    %78 = arith.mulf %14, %72 : vector<8x32xf32>
    %cst_15 = arith.constant 0.000000e+00 : f32
    %79 = vector.broadcast %cst_15 : f32 to vector<8x32xf32>
    %80 = arith.select %73, %79, %78 : vector<8x32xi1>, vector<8x32xf32>
    %81 = arith.addf %77, %80 : vector<8x32xf32>
    %82 = arith.cmpf ogt, %81, %11 : vector<8x32xf32>
    %83 = arith.extui %82 : vector<8x32xi1> to vector<8x32xi32>
    %84 = arith.sitofp %83 : vector<8x32xi32> to vector<8x32xf32>
    %85 = arith.addf %76, %84 : vector<8x32xf32>
    %86 = vector.extract_strided_slice %37 {offsets = [40, 0], sizes = [8, 32], strides = [1, 1]} : vector<64x32xf32> to vector<8x32xf32>
    %87 = arith.mulf %14, %81 : vector<8x32xf32>
    %cst_16 = arith.constant 0.000000e+00 : f32
    %88 = vector.broadcast %cst_16 : f32 to vector<8x32xf32>
    %89 = arith.select %82, %88, %87 : vector<8x32xi1>, vector<8x32xf32>
    %90 = arith.addf %86, %89 : vector<8x32xf32>
    %91 = arith.cmpf ogt, %90, %11 : vector<8x32xf32>
    %92 = arith.extui %91 : vector<8x32xi1> to vector<8x32xi32>
    %93 = arith.sitofp %92 : vector<8x32xi32> to vector<8x32xf32>
    %94 = arith.addf %85, %93 : vector<8x32xf32>
    %95 = vector.extract_strided_slice %37 {offsets = [48, 0], sizes = [8, 32], strides = [1, 1]} : vector<64x32xf32> to vector<8x32xf32>
    %96 = arith.mulf %14, %90 : vector<8x32xf32>
    %cst_17 = arith.constant 0.000000e+00 : f32
    %97 = vector.broadcast %cst_17 : f32 to vector<8x32xf32>
    %98 = arith.select %91, %97, %96 : vector<8x32xi1>, vector<8x32xf32>
    %99 = arith.addf %95, %98 : vector<8x32xf32>
    %100 = arith.cmpf ogt, %99, %11 : vector<8x32xf32>
    %101 = arith.extui %100 : vector<8x32xi1> to vector<8x32xi32>
    %102 = arith.sitofp %101 : vector<8x32xi32> to vector<8x32xf32>
    %103 = arith.addf %94, %102 : vector<8x32xf32>
    %104 = vector.extract_strided_slice %37 {offsets = [56, 0], sizes = [8, 32], strides = [1, 1]} : vector<64x32xf32> to vector<8x32xf32>
    %105 = arith.mulf %14, %99 : vector<8x32xf32>
    %cst_18 = arith.constant 0.000000e+00 : f32
    %106 = vector.broadcast %cst_18 : f32 to vector<8x32xf32>
    %107 = arith.select %100, %106, %105 : vector<8x32xi1>, vector<8x32xf32>
    %108 = arith.addf %104, %107 : vector<8x32xf32>
    %109 = arith.cmpf ogt, %108, %11 : vector<8x32xf32>
    %110 = arith.extui %109 : vector<8x32xi1> to vector<8x32xi32>
    %111 = arith.sitofp %110 : vector<8x32xi32> to vector<8x32xf32>
    %112 = arith.addf %103, %111 : vector<8x32xf32>
    %113 = tpu.concatenate %48, %57, %66, %75, %84, %93, %102, %111 in 0 : vector<8x32xf32>, vector<8x32xf32>, vector<8x32xf32>, vector<8x32xf32>, vector<8x32xf32>, vector<8x32xf32>, vector<8x32xf32>, vector<8x32xf32> -> vector<64x32xf32>
    %cst_19 = arith.constant dense<0.000000e+00> : vector<64x32xf32>
    %114 = tpu.matmul %113, %1, %cst_19 {dimension_numbers = #tpu.dot_dimension_numbers<[1], [0], [0], [1], [0, 0, 1, 1], [], []>} : vector<64x32xf32>, vector<32x32xf32>, vector<64x32xf32> -> vector<64x32xf32>
    %115 = vector.broadcast %6 : vector<1x32xf32> to vector<64x32xf32>
    %116 = arith.addf %114, %115 : vector<64x32xf32>
    %cst_20 = arith.constant 0.000000e+00 : f32
    %117 = vector.broadcast %cst_20 : f32 to vector<8x32xf32>
    %false_21 = arith.constant false
    %118 = vector.broadcast %false_21 : i1 to vector<8x32xi1>
    %cst_22 = arith.constant 0.000000e+00 : f32
    %119 = vector.broadcast %cst_22 : f32 to vector<8x32xf32>
    %120 = vector.extract_strided_slice %116 {offsets = [0, 0], sizes = [8, 32], strides = [1, 1]} : vector<64x32xf32> to vector<8x32xf32>
    %121 = arith.mulf %20, %117 : vector<8x32xf32>
    %cst_23 = arith.constant 0.000000e+00 : f32
    %122 = vector.broadcast %cst_23 : f32 to vector<8x32xf32>
    %123 = arith.select %118, %122, %121 : vector<8x32xi1>, vector<8x32xf32>
    %124 = arith.addf %120, %123 : vector<8x32xf32>
    %125 = arith.cmpf ogt, %124, %17 : vector<8x32xf32>
    %126 = arith.extui %125 : vector<8x32xi1> to vector<8x32xi32>
    %127 = arith.sitofp %126 : vector<8x32xi32> to vector<8x32xf32>
    %128 = arith.addf %119, %127 : vector<8x32xf32>
    %129 = vector.extract_strided_slice %116 {offsets = [8, 0], sizes = [8, 32], strides = [1, 1]} : vector<64x32xf32> to vector<8x32xf32>
    %130 = arith.mulf %20, %124 : vector<8x32xf32>
    %cst_24 = arith.constant 0.000000e+00 : f32
    %131 = vector.broadcast %cst_24 : f32 to vector<8x32xf32>
    %132 = arith.select %125, %131, %130 : vector<8x32xi1>, vector<8x32xf32>
    %133 = arith.addf %129, %132 : vector<8x32xf32>
    %134 = arith.cmpf ogt, %133, %17 : vector<8x32xf32>
    %135 = arith.extui %134 : vector<8x32xi1> to vector<8x32xi32>
    %136 = arith.sitofp %135 : vector<8x32xi32> to vector<8x32xf32>
    %137 = arith.addf %128, %136 : vector<8x32xf32>
    %138 = vector.extract_strided_slice %116 {offsets = [16, 0], sizes = [8, 32], strides = [1, 1]} : vector<64x32xf32> to vector<8x32xf32>
    %139 = arith.mulf %20, %133 : vector<8x32xf32>
    %cst_25 = arith.constant 0.000000e+00 : f32
    %140 = vector.broadcast %cst_25 : f32 to vector<8x32xf32>
    %141 = arith.select %134, %140, %139 : vector<8x32xi1>, vector<8x32xf32>
    %142 = arith.addf %138, %141 : vector<8x32xf32>
    %143 = arith.cmpf ogt, %142, %17 : vector<8x32xf32>
    %144 = arith.extui %143 : vector<8x32xi1> to vector<8x32xi32>
    %145 = arith.sitofp %144 : vector<8x32xi32> to vector<8x32xf32>
    %146 = arith.addf %137, %145 : vector<8x32xf32>
    %147 = vector.extract_strided_slice %116 {offsets = [24, 0], sizes = [8, 32], strides = [1, 1]} : vector<64x32xf32> to vector<8x32xf32>
    %148 = arith.mulf %20, %142 : vector<8x32xf32>
    %cst_26 = arith.constant 0.000000e+00 : f32
    %149 = vector.broadcast %cst_26 : f32 to vector<8x32xf32>
    %150 = arith.select %143, %149, %148 : vector<8x32xi1>, vector<8x32xf32>
    %151 = arith.addf %147, %150 : vector<8x32xf32>
    %152 = arith.cmpf ogt, %151, %17 : vector<8x32xf32>
    %153 = arith.extui %152 : vector<8x32xi1> to vector<8x32xi32>
    %154 = arith.sitofp %153 : vector<8x32xi32> to vector<8x32xf32>
    %155 = arith.addf %146, %154 : vector<8x32xf32>
    %156 = vector.extract_strided_slice %116 {offsets = [32, 0], sizes = [8, 32], strides = [1, 1]} : vector<64x32xf32> to vector<8x32xf32>
    %157 = arith.mulf %20, %151 : vector<8x32xf32>
    %cst_27 = arith.constant 0.000000e+00 : f32
    %158 = vector.broadcast %cst_27 : f32 to vector<8x32xf32>
    %159 = arith.select %152, %158, %157 : vector<8x32xi1>, vector<8x32xf32>
    %160 = arith.addf %156, %159 : vector<8x32xf32>
    %161 = arith.cmpf ogt, %160, %17 : vector<8x32xf32>
    %162 = arith.extui %161 : vector<8x32xi1> to vector<8x32xi32>
    %163 = arith.sitofp %162 : vector<8x32xi32> to vector<8x32xf32>
    %164 = arith.addf %155, %163 : vector<8x32xf32>
    %165 = vector.extract_strided_slice %116 {offsets = [40, 0], sizes = [8, 32], strides = [1, 1]} : vector<64x32xf32> to vector<8x32xf32>
    %166 = arith.mulf %20, %160 : vector<8x32xf32>
    %cst_28 = arith.constant 0.000000e+00 : f32
    %167 = vector.broadcast %cst_28 : f32 to vector<8x32xf32>
    %168 = arith.select %161, %167, %166 : vector<8x32xi1>, vector<8x32xf32>
    %169 = arith.addf %165, %168 : vector<8x32xf32>
    %170 = arith.cmpf ogt, %169, %17 : vector<8x32xf32>
    %171 = arith.extui %170 : vector<8x32xi1> to vector<8x32xi32>
    %172 = arith.sitofp %171 : vector<8x32xi32> to vector<8x32xf32>
    %173 = arith.addf %164, %172 : vector<8x32xf32>
    %174 = vector.extract_strided_slice %116 {offsets = [48, 0], sizes = [8, 32], strides = [1, 1]} : vector<64x32xf32> to vector<8x32xf32>
    %175 = arith.mulf %20, %169 : vector<8x32xf32>
    %cst_29 = arith.constant 0.000000e+00 : f32
    %176 = vector.broadcast %cst_29 : f32 to vector<8x32xf32>
    %177 = arith.select %170, %176, %175 : vector<8x32xi1>, vector<8x32xf32>
    %178 = arith.addf %174, %177 : vector<8x32xf32>
    %179 = arith.cmpf ogt, %178, %17 : vector<8x32xf32>
    %180 = arith.extui %179 : vector<8x32xi1> to vector<8x32xi32>
    %181 = arith.sitofp %180 : vector<8x32xi32> to vector<8x32xf32>
    %182 = arith.addf %173, %181 : vector<8x32xf32>
    %183 = vector.extract_strided_slice %116 {offsets = [56, 0], sizes = [8, 32], strides = [1, 1]} : vector<64x32xf32> to vector<8x32xf32>
    %184 = arith.mulf %20, %178 : vector<8x32xf32>
    %cst_30 = arith.constant 0.000000e+00 : f32
    %185 = vector.broadcast %cst_30 : f32 to vector<8x32xf32>
    %186 = arith.select %179, %185, %184 : vector<8x32xi1>, vector<8x32xf32>
    %187 = arith.addf %183, %186 : vector<8x32xf32>
    %188 = arith.cmpf ogt, %187, %17 : vector<8x32xf32>
    %189 = arith.extui %188 : vector<8x32xi1> to vector<8x32xi32>
    %190 = arith.sitofp %189 : vector<8x32xi32> to vector<8x32xf32>
    %191 = arith.addf %182, %190 : vector<8x32xf32>
    %192 = tpu.concatenate %127, %136, %145, %154, %163, %172, %181, %190 in 0 : vector<8x32xf32>, vector<8x32xf32>, vector<8x32xf32>, vector<8x32xf32>, vector<8x32xf32>, vector<8x32xf32>, vector<8x32xf32>, vector<8x32xf32> -> vector<64x32xf32>
    %cst_31 = arith.constant dense<0.000000e+00> : vector<64x32xf32>
    %193 = tpu.matmul %192, %2, %cst_31 {dimension_numbers = #tpu.dot_dimension_numbers<[1], [0], [0], [1], [0, 0, 1, 1], [], []>} : vector<64x32xf32>, vector<32x32xf32>, vector<64x32xf32> -> vector<64x32xf32>
    %194 = vector.broadcast %7 : vector<1x32xf32> to vector<64x32xf32>
    %195 = arith.addf %193, %194 : vector<64x32xf32>
    %cst_32 = arith.constant 0.000000e+00 : f32
    %196 = vector.broadcast %cst_32 : f32 to vector<8x32xf32>
    %false_33 = arith.constant false
    %197 = vector.broadcast %false_33 : i1 to vector<8x32xi1>
    %cst_34 = arith.constant 0.000000e+00 : f32
    %198 = vector.broadcast %cst_34 : f32 to vector<8x32xf32>
    %199 = vector.extract_strided_slice %195 {offsets = [0, 0], sizes = [8, 32], strides = [1, 1]} : vector<64x32xf32> to vector<8x32xf32>
    %200 = arith.mulf %30, %196 : vector<8x32xf32>
    %cst_35 = arith.constant 0.000000e+00 : f32
    %201 = vector.broadcast %cst_35 : f32 to vector<8x32xf32>
    %202 = arith.select %197, %201, %200 : vector<8x32xi1>, vector<8x32xf32>
    %203 = arith.addf %199, %202 : vector<8x32xf32>
    %204 = arith.cmpf ogt, %203, %27 : vector<8x32xf32>
    %205 = arith.extui %204 : vector<8x32xi1> to vector<8x32xi32>
    %206 = arith.sitofp %205 : vector<8x32xi32> to vector<8x32xf32>
    %207 = arith.addf %198, %206 : vector<8x32xf32>
    %208 = vector.extract_strided_slice %195 {offsets = [8, 0], sizes = [8, 32], strides = [1, 1]} : vector<64x32xf32> to vector<8x32xf32>
    %209 = arith.mulf %30, %203 : vector<8x32xf32>
    %cst_36 = arith.constant 0.000000e+00 : f32
    %210 = vector.broadcast %cst_36 : f32 to vector<8x32xf32>
    %211 = arith.select %204, %210, %209 : vector<8x32xi1>, vector<8x32xf32>
    %212 = arith.addf %208, %211 : vector<8x32xf32>
    %213 = arith.cmpf ogt, %212, %27 : vector<8x32xf32>
    %214 = arith.extui %213 : vector<8x32xi1> to vector<8x32xi32>
    %215 = arith.sitofp %214 : vector<8x32xi32> to vector<8x32xf32>
    %216 = arith.addf %207, %215 : vector<8x32xf32>
    %217 = vector.extract_strided_slice %195 {offsets = [16, 0], sizes = [8, 32], strides = [1, 1]} : vector<64x32xf32> to vector<8x32xf32>
    %218 = arith.mulf %30, %212 : vector<8x32xf32>
    %cst_37 = arith.constant 0.000000e+00 : f32
    %219 = vector.broadcast %cst_37 : f32 to vector<8x32xf32>
    %220 = arith.select %213, %219, %218 : vector<8x32xi1>, vector<8x32xf32>
    %221 = arith.addf %217, %220 : vector<8x32xf32>
    %222 = arith.cmpf ogt, %221, %27 : vector<8x32xf32>
    %223 = arith.extui %222 : vector<8x32xi1> to vector<8x32xi32>
    %224 = arith.sitofp %223 : vector<8x32xi32> to vector<8x32xf32>
    %225 = arith.addf %216, %224 : vector<8x32xf32>
    %226 = vector.extract_strided_slice %195 {offsets = [24, 0], sizes = [8, 32], strides = [1, 1]} : vector<64x32xf32> to vector<8x32xf32>
    %227 = arith.mulf %30, %221 : vector<8x32xf32>
    %cst_38 = arith.constant 0.000000e+00 : f32
    %228 = vector.broadcast %cst_38 : f32 to vector<8x32xf32>
    %229 = arith.select %222, %228, %227 : vector<8x32xi1>, vector<8x32xf32>
    %230 = arith.addf %226, %229 : vector<8x32xf32>
    %231 = arith.cmpf ogt, %230, %27 : vector<8x32xf32>
    %232 = arith.extui %231 : vector<8x32xi1> to vector<8x32xi32>
    %233 = arith.sitofp %232 : vector<8x32xi32> to vector<8x32xf32>
    %234 = arith.addf %225, %233 : vector<8x32xf32>
    %235 = vector.extract_strided_slice %195 {offsets = [32, 0], sizes = [8, 32], strides = [1, 1]} : vector<64x32xf32> to vector<8x32xf32>
    %236 = arith.mulf %30, %230 : vector<8x32xf32>
    %cst_39 = arith.constant 0.000000e+00 : f32
    %237 = vector.broadcast %cst_39 : f32 to vector<8x32xf32>
    %238 = arith.select %231, %237, %236 : vector<8x32xi1>, vector<8x32xf32>
    %239 = arith.addf %235, %238 : vector<8x32xf32>
    %240 = arith.cmpf ogt, %239, %27 : vector<8x32xf32>
    %241 = arith.extui %240 : vector<8x32xi1> to vector<8x32xi32>
    %242 = arith.sitofp %241 : vector<8x32xi32> to vector<8x32xf32>
    %243 = arith.addf %234, %242 : vector<8x32xf32>
    %244 = vector.extract_strided_slice %195 {offsets = [40, 0], sizes = [8, 32], strides = [1, 1]} : vector<64x32xf32> to vector<8x32xf32>
    %245 = arith.mulf %30, %239 : vector<8x32xf32>
    %cst_40 = arith.constant 0.000000e+00 : f32
    %246 = vector.broadcast %cst_40 : f32 to vector<8x32xf32>
    %247 = arith.select %240, %246, %245 : vector<8x32xi1>, vector<8x32xf32>
    %248 = arith.addf %244, %247 : vector<8x32xf32>
    %249 = arith.cmpf ogt, %248, %27 : vector<8x32xf32>
    %250 = arith.extui %249 : vector<8x32xi1> to vector<8x32xi32>
    %251 = arith.sitofp %250 : vector<8x32xi32> to vector<8x32xf32>
    %252 = arith.addf %243, %251 : vector<8x32xf32>
    %253 = vector.extract_strided_slice %195 {offsets = [48, 0], sizes = [8, 32], strides = [1, 1]} : vector<64x32xf32> to vector<8x32xf32>
    %254 = arith.mulf %30, %248 : vector<8x32xf32>
    %cst_41 = arith.constant 0.000000e+00 : f32
    %255 = vector.broadcast %cst_41 : f32 to vector<8x32xf32>
    %256 = arith.select %249, %255, %254 : vector<8x32xi1>, vector<8x32xf32>
    %257 = arith.addf %253, %256 : vector<8x32xf32>
    %258 = arith.cmpf ogt, %257, %27 : vector<8x32xf32>
    %259 = arith.extui %258 : vector<8x32xi1> to vector<8x32xi32>
    %260 = arith.sitofp %259 : vector<8x32xi32> to vector<8x32xf32>
    %261 = arith.addf %252, %260 : vector<8x32xf32>
    %262 = vector.extract_strided_slice %195 {offsets = [56, 0], sizes = [8, 32], strides = [1, 1]} : vector<64x32xf32> to vector<8x32xf32>
    %263 = arith.mulf %30, %257 : vector<8x32xf32>
    %cst_42 = arith.constant 0.000000e+00 : f32
    %264 = vector.broadcast %cst_42 : f32 to vector<8x32xf32>
    %265 = arith.select %258, %264, %263 : vector<8x32xi1>, vector<8x32xf32>
    %266 = arith.addf %262, %265 : vector<8x32xf32>
    %267 = arith.cmpf ogt, %266, %27 : vector<8x32xf32>
    %268 = arith.extui %267 : vector<8x32xi1> to vector<8x32xi32>
    %269 = arith.sitofp %268 : vector<8x32xi32> to vector<8x32xf32>
    %270 = arith.addf %261, %269 : vector<8x32xf32>
    %271 = tpu.concatenate %206, %215, %224, %233, %242, %251, %260, %269 in 0 : vector<8x32xf32>, vector<8x32xf32>, vector<8x32xf32>, vector<8x32xf32>, vector<8x32xf32>, vector<8x32xf32>, vector<8x32xf32>, vector<8x32xf32> -> vector<64x32xf32>
    %cst_43 = arith.constant dense<0.000000e+00> : vector<64x32xf32>
    %272 = tpu.matmul %271, %3, %cst_43 {dimension_numbers = #tpu.dot_dimension_numbers<[1], [0], [0], [1], [0, 0, 1, 1], [], []>} : vector<64x32xf32>, vector<32x32xf32>, vector<64x32xf32> -> vector<64x32xf32>
    %273 = vector.broadcast %8 : vector<1x32xf32> to vector<64x32xf32>
    %274 = arith.addf %272, %273 : vector<64x32xf32>
    %cst_44 = arith.constant 0.000000e+00 : f32
    %275 = vector.broadcast %cst_44 : f32 to vector<8x32xf32>
    %276 = arith.mulf %33, %275 : vector<8x32xf32>
    %277 = vector.extract_strided_slice %274 {offsets = [0, 0], sizes = [8, 32], strides = [1, 1]} : vector<64x32xf32> to vector<8x32xf32>
    %278 = arith.addf %276, %277 : vector<8x32xf32>
    %279 = arith.mulf %33, %278 : vector<8x32xf32>
    %280 = vector.extract_strided_slice %274 {offsets = [8, 0], sizes = [8, 32], strides = [1, 1]} : vector<64x32xf32> to vector<8x32xf32>
    %281 = arith.addf %279, %280 : vector<8x32xf32>
    %282 = arith.mulf %33, %281 : vector<8x32xf32>
    %283 = vector.extract_strided_slice %274 {offsets = [16, 0], sizes = [8, 32], strides = [1, 1]} : vector<64x32xf32> to vector<8x32xf32>
    %284 = arith.addf %282, %283 : vector<8x32xf32>
    %285 = arith.mulf %33, %284 : vector<8x32xf32>
    %286 = vector.extract_strided_slice %274 {offsets = [24, 0], sizes = [8, 32], strides = [1, 1]} : vector<64x32xf32> to vector<8x32xf32>
    %287 = arith.addf %285, %286 : vector<8x32xf32>
    %288 = arith.mulf %33, %287 : vector<8x32xf32>
    %289 = vector.extract_strided_slice %274 {offsets = [32, 0], sizes = [8, 32], strides = [1, 1]} : vector<64x32xf32> to vector<8x32xf32>
    %290 = arith.addf %288, %289 : vector<8x32xf32>
    %291 = arith.mulf %33, %290 : vector<8x32xf32>
    %292 = vector.extract_strided_slice %274 {offsets = [40, 0], sizes = [8, 32], strides = [1, 1]} : vector<64x32xf32> to vector<8x32xf32>
    %293 = arith.addf %291, %292 : vector<8x32xf32>
    %294 = arith.mulf %33, %293 : vector<8x32xf32>
    %295 = vector.extract_strided_slice %274 {offsets = [48, 0], sizes = [8, 32], strides = [1, 1]} : vector<64x32xf32> to vector<8x32xf32>
    %296 = arith.addf %294, %295 : vector<8x32xf32>
    %297 = arith.mulf %33, %296 : vector<8x32xf32>
    %298 = vector.extract_strided_slice %274 {offsets = [56, 0], sizes = [8, 32], strides = [1, 1]} : vector<64x32xf32> to vector<8x32xf32>
    %299 = arith.addf %297, %298 : vector<8x32xf32>
    %300 = tpu.concatenate %278, %281, %284, %287, %290, %293, %296, %299 in 0 : vector<8x32xf32>, vector<8x32xf32>, vector<8x32xf32>, vector<8x32xf32>, vector<8x32xf32>, vector<8x32xf32>, vector<8x32xf32>, vector<8x32xf32> -> vector<64x32xf32>
    %cst_45 = arith.constant 0.000000e+00 : f32
    %301 = vector.broadcast %cst_45 : f32 to vector<64x96xf32>
    %302 = tpu.concatenate %300, %301 in 1 : vector<64x32xf32>, vector<64x96xf32> -> vector<64x128xf32>
    %cst_46 = arith.constant 1.250000e-01 : f32
    %303 = vector.broadcast %cst_46 : f32 to vector<8x32xf32>
    %304 = arith.mulf %112, %303 : vector<8x32xf32>
    %cst_47 = arith.constant 1.250000e-01 : f32
    %305 = vector.broadcast %cst_47 : f32 to vector<8x32xf32>
    %306 = arith.mulf %191, %305 : vector<8x32xf32>
    %cst_48 = arith.constant 1.250000e-01 : f32
    %307 = vector.broadcast %cst_48 : f32 to vector<8x32xf32>
    %308 = arith.mulf %270, %307 : vector<8x32xf32>
    %cst_49 = arith.constant 0.000000e+00 : f32
    %309 = vector.broadcast %cst_49 : f32 to vector<8x32xf32>
    %310 = tpu.concatenate %304, %306, %308, %309 in 1 : vector<8x32xf32>, vector<8x32xf32>, vector<8x32xf32>, vector<8x32xf32> -> vector<8x128xf32>
    %311 = tpu.concatenate %302, %310 in 0 : vector<64x128xf32>, vector<8x128xf32> -> vector<72x128xf32>
    %c0_50 = arith.constant 0 : index
    %c0_51 = arith.constant 0 : index
    %312 = vector.load %arg3[%c0_50, %c0_51] : memref<72x128xf32, #tpu.memory_space<vmem>>, vector<72x128xf32>
    tpu.vector_store %arg3[%c0_50, %c0_51], %311 {strides = array<i32>} : memref<72x128xf32, #tpu.memory_space<vmem>>, vector<72x128xf32>,
    return
  }
}

</mosaic_0001>

<bundles_post_ra>
// kernel: tpu_custom_call.1
= control target key start
LH: loop header
LB: loop body
LE: loop exit
PB: predicated region body
PF: predicated region fallthrough
CT: control target
= control target key end

     0   :  { %vm86_vm0 = vcmask 785408   ;;  %s1374_s0 = inlined_call_operand.vmem [shape: f32[64,96], index: 0, kind: input, shape index: {}]   ;;  %s1375_s1 = inlined_call_operand.vmem [shape: f32[192,32], index: 1, kind: input, shape index: {}]   ;;  %s1376_s2 = inlined_call_operand.vmem [shape: f32[11,32], index: 2, kind: input, shape index: {}]   ;;  %s1377_s3 = inlined_call_operand.hbm [shape: f32[72,128], index: 3, kind: output, shape index: {}]  }
   0x1   :  { %v26_v0 = vld [vmem:[%s1375_s1 + $0x58] sm:$0xff]  ;;  %v25_v1 = vld [vmem:[%s1375_s1 + $0x50] sm:$0xff]  ;;  %v24_v2 = vld [vmem:[%s1375_s1 + $0x48] sm:$0xff] }
   0x2   :  { %957 = vmatprep.subr.mxu0 %v26_v0  ;;  %v23_v3 = vld [vmem:[%s1375_s1 + $0x40] sm:$0xff]  ;;  %v22_v5 = vld [vmem:[%s1375_s1 + $0x38] sm:$0xff] }
   0x3   :  { %958 = vmatpush3.msra.mxu0 %v26_v0  ;;  %v74_v4 = vld [vmem:[%s1374_s0] sm:$0xff] }
   0x4   :  { %959 = vmatprep.subr.mxu0 %v25_v1  ;;  %981 = vmatprep.mubr.msk.f32.mxu0 %vm86_vm0, %v74_v4 }
   0x5   :  { %960 = vmatpush3.msra.mxu0 %v25_v1 }
   0x6   :  { %961 = vmatprep.subr.mxu0 %v24_v2 }
   0x7   :  { %962 = vmatpush3.msra.mxu0 %v24_v2 }
   0x8   :  { %963 = vmatprep.subr.mxu0 %v23_v3 }
   0x9   :  { %8 = vsyncpa [#allocation3], 0  ;;  %964 = vmatpush3.msra.mxu0 %v23_v3  ;;  %v21_v6 = vld [vmem:[%s1375_s1 + $0x30] sm:$0xff]  ;;  %v20_v7 = vld [vmem:[%s1375_s1 + $0x28] sm:$0xff]  ;;  %v41_v25 = vlaneseq  ;;  %vm275_vm1 = vcmask 261120   ;;  %v1089_v42 = vmov 0.0  }
   0xa   :  { %965 = vmatprep.subr.mxu0 %v22_v5  ;;  %v19_v8 = vld [vmem:[%s1375_s1 + $0x20] sm:$0xff]  ;;  %v18_v9 = vld [vmem:[%s1375_s1 + $0x18] sm:$0xff]  ;;  %v17_v10 = vld [vmem:[%s1375_s1 + $0x10] sm:$0xff]  ;;  %s1090_s15 = smov 32  }
   0xb   :  { %966 = vmatpush3.msra.mxu0 %v22_v5  ;;  %v16_v11 = vld [vmem:[%s1375_s1 + $0x8] sm:$0xff]  ;;  %v15_v12 = vld [vmem:[%s1375_s1] sm:$0xff]  ;;  %v76_v14 = vld [vmem:[%s1374_s0 + $0x10] sm:$0xff]  ;;  %v1198_v26 = vshrl.u32 %v41_v25, 7 }
   0xc   :  { %967 = vmatprep.subr.mxu0 %v21_v6  ;;  %v75_v13 = vld [vmem:[%s1374_s0 + $0x8] sm:$0xff]  ;;  %v77_v15 = vld [vmem:[%s1374_s0 + $0x18] sm:$0xff]  ;;  %v78_v16 = vld [vmem:[%s1374_s0 + $0x20] sm:$0xff] }
   0xd   :  { %968 = vmatpush3.msra.mxu0 %v21_v6  ;;  %v79_v17 = vld [vmem:[%s1374_s0 + $0x28] sm:$0xff]  ;;  %v80_v18 = vld [vmem:[%s1374_s0 + $0x30] sm:$0xff]  ;;  %v81_v19 = vld [vmem:[%s1374_s0 + $0x38] sm:$0xff]  ;;  %v47_v27 = vsub.s32 5, %v1198_v26  ;;  %v84_v29 = vsub.s32 0, %v1198_v26  ;;  %v43_v31 = vsub.s32 4, %v1198_v26 }
   0xe   :  { %969 = vmatprep.subr.mxu0 %v20_v7  ;;  %v30_v20 = vld [vmem:[%s1375_s1 + $0x78] sm:$0xff]  ;;  %v29_v21 = vld [vmem:[%s1375_s1 + $0x70] sm:$0xff]  ;;  %v28_v22 = vld [vmem:[%s1375_s1 + $0x68] sm:$0xff] }
   0xf   :  { %970 = vmatpush3.msra.mxu0 %v20_v7  ;;  %993 = vmatprep.subr.mxu1 %v30_v20  ;;  %v27_v23 = vld [vmem:[%s1375_s1 + $0x60] sm:$0xff]  ;;  %v34_v24 = vld [vmem:[%s1375_s1 + $0x98] sm:$0xff]  ;;  %v33_v25 = vld [vmem:[%s1375_s1 + $0x90] sm:$0xff] }
  0x10   :  { %971 = vmatprep.subr.mxu0 %v19_v8  ;;  %994 = vmatpush3.msra.mxu1 %v30_v20  ;;  %v1204_v28 = vld [vmem:[%s1376_s2] sm:$0xff] }
  0x11   :  { %972 = vmatpush3.msra.mxu0 %v19_v8  ;;  %995 = vmatprep.subr.mxu1 %v29_v21  ;;  %v1208_v30 = vrot.slane %v1204_v28, %v47_v27  ;;  %v1212_v33 = vrot.slane %v1204_v28, %v84_v29  ;;  %v1217_v37 = vrot.slane %v1204_v28, %v43_v31  ;;  %v32_v27 = vld [vmem:[%s1375_s1 + $0x88] sm:$0xff]  ;;  %v31_v29 = vld [vmem:[%s1375_s1 + $0x80] sm:$0xff]  ;;  %v1270_v31 = vsub.s32 1, %v1198_v26 }
  0x12   :  { %973 = vmatprep.subr.mxu0 %v18_v9  ;;  %996 = vmatpush3.msra.mxu1 %v29_v21 }
  0x13   :  { %974 = vmatpush3.msra.mxu0 %v18_v9  ;;  %997 = vmatprep.subr.mxu1 %v28_v22  ;;  %v216_v34 = vmul.f32 0.0, %v1208_v30 }
  0x14   :  { %975 = vmatprep.subr.mxu0 %v17_v10  ;;  %998 = vmatpush3.msra.mxu1 %v28_v22 }
  0x15   :  { %976 = vmatpush3.msra.mxu0 %v17_v10  ;;  %999 = vmatprep.subr.mxu1 %v27_v23 }
  0x16   :  { %977 = vmatprep.subr.mxu0 %v16_v11  ;;  %1000 = vmatpush3.msra.mxu1 %v27_v23 }
  0x17   :  { %978 = vmatpush3.msra.mxu0 %v16_v11  ;;  %1013 = vmatprep.subr.mxu1 %v34_v24 }
  0x18   :  { %979 = vmatprep.subr.mxu0 %v15_v12 }
  0x19   :  { %980 = vmatpush3.msra.mxu0 %v15_v12 }
  0x1a   :  { %982 = vmatmul.mubr.msk.f32.vlgmr.msra.gmra.mxu0 %vm86_vm0, %v75_v13 }
  0x1b   :  { %984 = vmatprep.mubr.msk.f32.mxu0 %vm86_vm0, %v76_v14 }
  0x1e   :  { %985 = vmatmul.mubr.msk.f32.gmra.mxu0 %vm86_vm0, %v77_v15 }
  0x1f   :  { %987 = vmatprep.mubr.msk.f32.mxu0 %vm86_vm0, %v78_v16 }
  0x22   :  { %988 = vmatmul.mubr.msk.f32.gmra.mxu0 %vm86_vm0, %v79_v17 }
  0x23   :  { %990 = vmatprep.mubr.msk.f32.mxu0 %vm86_vm0, %v80_v18 }
  0x26   :  { %991 = vmatmul.mubr.msk.f32.gmra.mxu0 %vm86_vm0, %v81_v19 }
  0xda   :  { %v983_v32 = vpop.f32.mrf.mxu0 }
  0xdb   :  { %v183_v41 = vadd.f32 %v983_v32, %v1212_v33 }
  0xdc   :  { %v177_v35 = vpop.f32.mrf.mxu0 }
  0xdd   :  { %v178_v36 = vadd.f32 %v177_v35, %v1212_v33  ;;  %v274_v35 = vrot.slane %v1204_v28, %v1270_v31 }
  0xde   :  { %v986_v39 = vpop.f32.mrf.mxu0 }
  0xdf   :  { %v217_v38 = vadd.f32 %v216_v34, %v178_v36  ;;  %v193_v55 = vadd.f32 %v986_v39, %v1212_v33 }
  0xe0   :  { %v187_v46 = vpop.f32.mrf.mxu0 }
  0xe1   :  { %vm218_vm2 = vcmp.gt.f32.partialorder %v217_v38, %v1217_v37  ;;  %v222_v40 = vmul.f32 %v217_v38, %v1208_v30  ;;  %v188_v49 = vadd.f32 %v187_v46, %v1212_v33 }
  0xe2   :  { %v853_v43 = vsel %vm218_vm2, 1.0, %v1089_v42  ;;  %v989_v53 = vpop.f32.mrf.mxu0 }
  0xe3   :  { %v223_v44 = vsel %vm218_vm2, 0.0, %v222_v40  ;;  %1001 = vmatprep.mubr.msk.f32.mxu1 %vm275_vm1, %v853_v43  ;;  %v203_v5 = vadd.f32 %v989_v53, %v1212_v33 }
  0xe4   :  { %v224_v45 = vadd.f32 %v223_v44, %v183_v41  ;;  %v197_v59 = vpop.f32.mrf.mxu0 }
  0xe5   :  { %v198_v62 = vadd.f32 %v197_v59, %v1212_v33 }
  0xe6   :  { %vm225_vm3 = vcmp.gt.f32.partialorder %v224_v45, %v1217_v37  ;;  %v229_v47 = vmul.f32 %v224_v45, %v1208_v30  ;;  %v992_v3 = vpop.f32.mrf.mxu0 }
  0xe7   :  { %v854_v48 = vsel %vm225_vm3, 1.0, %v1089_v42  ;;  %v213_v18 = vadd.f32 %v992_v3, %v1212_v33 }
  0xe8   :  { %v228_v50 = vadd.f32 %v854_v48, %v853_v43  ;;  %v230_v51 = vsel %vm225_vm3, 0.0, %v229_v47  ;;  %1002 = vmatmul.mubr.msk.f32.vlgmr.msra.gmra.mxu1 %vm275_vm1, %v854_v48  ;;  %v207_v9 = vpop.f32.mrf.mxu0 }
  0xe9   :  { %v231_v52 = vadd.f32 %v230_v51, %v188_v49  ;;  %1014 = vmatpush3.msra.mxu1 %v34_v24  ;;  %v208_v12 = vadd.f32 %v207_v9, %v1212_v33  ;;  %v51_v33 = vsub.s32 6, %v1198_v26 }
  0xea   :  { %1015 = vmatprep.subr.mxu1 %v33_v25 }
  0xeb   :  { %v236_v54 = vmul.f32 %v231_v52, %v1208_v30  ;;  %vm232_vm4 = vcmp.gt.f32.partialorder %v231_v52, %v1217_v37  ;;  %1016 = vmatpush3.msra.mxu1 %v33_v25  ;;  %v1277_v39 = vrot.slane %v1204_v28, %v51_v33  ;;  %v37_v33 = vld [vmem:[%s1375_s1 + $0xb0] sm:$0xff] }
  0xec   :  { %v855_v56 = vsel %vm232_vm4, 1.0, %v1089_v42  ;;  %1017 = vmatprep.subr.mxu1 %v32_v27 }
  0xed   :  { %v235_v57 = vadd.f32 %v855_v56, %v228_v50  ;;  %v237_v58 = vsel %vm232_vm4, 0.0, %v236_v54  ;;  %1004 = vmatprep.mubr.msk.f32.mxu1 %vm275_vm1, %v855_v56  ;;  %1018 = vmatpush3.msra.mxu1 %v32_v27 }
  0xee   :  { %v238_v60 = vadd.f32 %v237_v58, %v193_v55  ;;  %1019 = vmatprep.subr.mxu1 %v31_v29 }
  0xef   :  { %1020 = vmatpush3.msra.mxu1 %v31_v29 }
  0xf0   :  { %vm239_vm5 = vcmp.gt.f32.partialorder %v238_v60, %v1217_v37  ;;  %v243_v61 = vmul.f32 %v238_v60, %v1208_v30 }
  0xf1   :  { %v856_v63 = vsel %vm239_vm5, 1.0, %v1089_v42 }
  0xf2   :  { %v244_v0 = vsel %vm239_vm5, 0.0, %v243_v61  ;;  %v242_v1 = vadd.f32 %v856_v63, %v235_v57  ;;  %1005 = vmatmul.mubr.msk.f32.gmra.mxu1 %vm275_vm1, %v856_v63 }
  0xf3   :  { %v245_v2 = vadd.f32 %v244_v0, %v198_v62 }
  0xf5   :  { %v250_v4 = vmul.f32 %v245_v2, %v1208_v30  ;;  %vm246_vm6 = vcmp.gt.f32.partialorder %v245_v2, %v1217_v37 }
  0xf6   :  { %v857_v6 = vsel %vm246_vm6, 1.0, %v1089_v42 }
  0xf7   :  { %v249_v7 = vadd.f32 %v857_v6, %v242_v1  ;;  %v251_v8 = vsel %vm246_vm6, 0.0, %v250_v4  ;;  %1007 = vmatprep.mubr.msk.f32.mxu1 %vm275_vm1, %v857_v6 }
  0xf8   :  { %v252_v10 = vadd.f32 %v251_v8, %v203_v5 }
  0xfa   :  { %vm253_vm7 = vcmp.gt.f32.partialorder %v252_v10, %v1217_v37  ;;  %v257_v11 = vmul.f32 %v252_v10, %v1208_v30 }
  0xfb   :  { %v858_v13 = vsel %vm253_vm7, 1.0, %v1089_v42 }
  0xfc   :  { %v258_v14 = vsel %vm253_vm7, 0.0, %v257_v11  ;;  %v256_v15 = vadd.f32 %v858_v13, %v249_v7  ;;  %1008 = vmatmul.mubr.msk.f32.gmra.mxu1 %vm275_vm1, %v858_v13 }
  0xfd   :  { %v259_v16 = vadd.f32 %v258_v14, %v208_v12 }
  0xff   :  { %v264_v17 = vmul.f32 %v259_v16, %v1208_v30  ;;  %vm260_vm8 = vcmp.gt.f32.partialorder %v259_v16, %v1217_v37  ;;  %v55_v30 = vsub.s32 7, %v1198_v26 }
 0x100   :  { %v859_v19 = vsel %vm260_vm8, 1.0, %v1089_v42 }
 0x101   :  { %v263_v20 = vadd.f32 %v859_v19, %v256_v15  ;;  %v265_v21 = vsel %vm260_vm8, 0.0, %v264_v17  ;;  %1010 = vmatprep.mubr.msk.f32.mxu1 %vm275_vm1, %v859_v19  ;;  %v56_v32 = vrot.slane %v1204_v28, %v55_v30 }
 0x102   :  { %v266_v22 = vadd.f32 %v265_v21, %v213_v18 }
 0x103   :  { %v405_v36 = vmul.f32 0.0, %v56_v32 }
 0x104   :  { %vm267_vm9 = vcmp.gt.f32.partialorder %v266_v22, %v1217_v37 }
 0x105   :  { %v860_v23 = vsel %vm267_vm9, 1.0, %v1089_v42 }
 0x106   :  { %v1256_v24 = vadd.f32 %v860_v23, %v263_v20  ;;  %1011 = vmatmul.mubr.msk.f32.gmra.mxu1 %vm275_vm1, %v860_v23 }
 0x1a8   :  { %v1003_v34 = vpop.f32.mrf.mxu1 }
 0x1a9   :  { %v372_v43 = vadd.f32 %v1003_v34, %v274_v35  ;;  %v36_v34 = vld [vmem:[%s1375_s1 + $0xa8] sm:$0xff] }
 0x1aa   :  { %v366_v37 = vpop.f32.mrf.mxu1 }
 0x1ab   :  { %v367_v38 = vadd.f32 %v366_v37, %v274_v35 }
 0x1ad   :  { %v406_v40 = vadd.f32 %v405_v36, %v367_v38  ;;  %v1318_v36 = vld [vmem:[%s1376_s2 + $0x8] sm:$0x7]  ;;  %s1092_s2 = smov [#allocation2]  }
 0x1ae   :  { %v57_v37 = vmul.f32 0.0, %v1318_v36  ;;  %v59_v38 = vrot.slane %v1318_v36, 7  ;;  %s834_s26 = sshll.u32 %s1092_s2, 4  ;;  %s835_s26 = int_to_ptr.vmem [resolvable:$true] %s834_s26 }
 0x1af   :  { %v411_v41 = vmul.f32 %v406_v40, %v56_v32  ;;  %vm407_vm10 = vcmp.gt.f32.partialorder %v406_v40, %v1277_v39  ;;  %v69_v40 = vrot.slane %v1318_v36, %v1270_v31  ;;  %s1067_s27 = scalar_lea.vmem %s835_s26, 1152  ;;  %p1072_p1 = scmp.lt.s32.totalorder %s835_s26, %s835_s26 }
 0x1b0   :  { %v869_v44 = vsel %vm407_vm10, 1.0, %v1089_v42  ;;  %p1068_p0 = scmp.ne.s32.totalorder %s835_s26, %s1067_s27  ;;  %p1073_p2 = scmp.lt.s32.totalorder %s1067_s27, %s1067_s27 }
 0x1b1   :  { %v412_v45 = vsel %vm407_vm10, 0.0, %v411_v41  ;;  %1021 = vmatprep.mubr.msk.f32.mxu1 %vm275_vm1, %v869_v44  ;;  %v61_v41 = vadd.f32 %v59_v38, %v57_v37 }
 0x1b2   :  { %v413_v46 = vadd.f32 %v412_v45, %v372_v43  ;;  %v1006_v47 = vpop.f32.mrf.mxu1  ;;  %v593_v45 = vmul.f32 0.0, %v69_v40  ;;  %p1074_p3 = por %p1073_p2, %p1072_p1 }
 0x1b3   :  { %v382_v55 = vadd.f32 %v1006_v47, %v274_v35 }
 0x1b4   :  { %vm414_vm11 = vcmp.gt.f32.partialorder %v413_v46, %v1277_v39  ;;  %v376_v48 = vpop.f32.mrf.mxu1  ;;  %v418_v49 = vmul.f32 %v413_v46, %v56_v32  ;;  %p1075_p4 = pnand %p1074_p3, %p1068_p0 }
 0x1b5   :  { %v870_v50 = vsel %vm414_vm11, 1.0, %v1089_v42  ;;  %v377_v51 = vadd.f32 %v376_v48, %v274_v35  ;;  %v1329_v48 = vrot.slane %v61_v41, %v1270_v31 }
 0x1b6   :  { %v419_v52 = vsel %vm414_vm11, 0.0, %v418_v49  ;;  %1022 = vmatmul.mubr.msk.f32.vlgmr.msra.gmra.mxu1 %vm275_vm1, %v870_v50  ;;  %v417_v8 = vadd.f32 %v870_v50, %v869_v44 }
 0x1b7   :  { %v420_v53 = vadd.f32 %v419_v52, %v377_v51 }
 0x1b9   :  { %v425_v54 = vmul.f32 %v420_v53, %v56_v32  ;;  %vm421_vm12 = vcmp.gt.f32.partialorder %v420_v53, %v1277_v39 }
 0x1ba   :  { %v871_v56 = vsel %vm421_vm12, 1.0, %v1089_v42 }
 0x1bb   :  { %v426_v57 = vsel %vm421_vm12, 0.0, %v425_v54  ;;  %1024 = vmatprep.mubr.msk.f32.mxu1 %vm275_vm1, %v871_v56  ;;  %v424_v13 = vadd.f32 %v871_v56, %v417_v8  ;;  %vm817_vm12 = vcmask 523264  }
 0x1bc   :  { %v1009_v58 = vpop.f32.mrf.mxu1  ;;  %v427_v59 = vadd.f32 %v426_v57, %v382_v55 }
 0x1bd   :  { %v392_v3 = vadd.f32 %v1009_v58, %v274_v35 }
 0x1be   :  { %v386_v60 = vpop.f32.mrf.mxu1  ;;  %vm428_vm13 = vcmp.gt.f32.partialorder %v427_v59, %v1277_v39  ;;  %v432_v61 = vmul.f32 %v427_v59, %v56_v32 }
 0x1bf   :  { %v387_v62 = vadd.f32 %v386_v60, %v274_v35  ;;  %v872_v63 = vsel %vm428_vm13, 1.0, %v1089_v42 }
 0x1c0   :  { %v433_v0 = vsel %vm428_vm13, 0.0, %v432_v61  ;;  %1025 = vmatmul.mubr.msk.f32.gmra.mxu1 %vm275_vm1, %v872_v63  ;;  %v431_v16 = vadd.f32 %v872_v63, %v424_v13 }
 0x1c1   :  { %v434_v1 = vadd.f32 %v433_v0, %v387_v62 }
 0x1c3   :  { %v439_v2 = vmul.f32 %v434_v1, %v56_v32  ;;  %vm435_vm14 = vcmp.gt.f32.partialorder %v434_v1, %v1277_v39 }
 0x1c4   :  { %v873_v4 = vsel %vm435_vm14, 1.0, %v1089_v42 }
 0x1c5   :  { %v440_v5 = vsel %vm435_vm14, 0.0, %v439_v2  ;;  %1027 = vmatprep.mubr.msk.f32.mxu1 %vm275_vm1, %v873_v4  ;;  %v438_v18 = vadd.f32 %v873_v4, %v431_v16 }
 0x1c6   :  { %v1012_v6 = vpop.f32.mrf.mxu1  ;;  %v441_v7 = vadd.f32 %v440_v5, %v392_v3 }
 0x1c7   :  { %v402_v19 = vadd.f32 %v1012_v6, %v274_v35 }
 0x1c8   :  { %v396_v9 = vpop.f32.mrf.mxu1  ;;  %vm442_vm15 = vcmp.gt.f32.partialorder %v441_v7, %v1277_v39  ;;  %v446_v10 = vmul.f32 %v441_v7, %v56_v32 }
 0x1c9   :  { %v397_v11 = vadd.f32 %v396_v9, %v274_v35  ;;  %v874_v12 = vsel %vm442_vm15, 1.0, %v1089_v42  ;;  %v35_v35 = vld [vmem:[%s1375_s1 + $0xa0] sm:$0xff] }
 0x1ca   :  { %v447_v14 = vsel %vm442_vm15, 0.0, %v446_v10  ;;  %1028 = vmatmul.mubr.msk.f32.gmra.mxu1 %vm275_vm1, %v874_v12  ;;  %v445_v22 = vadd.f32 %v874_v12, %v438_v18 }
 0x1cb   :  { %v448_v15 = vadd.f32 %v447_v14, %v397_v11 }
 0x1cd   :  { %v453_v17 = vmul.f32 %v448_v15, %v56_v32  ;;  %vm449_vm2 = vcmp.gt.f32.partialorder %v448_v15, %v1277_v39  ;;  %v38_v32 = vld [vmem:[%s1375_s1 + $0xb8] sm:$0xff]  ;;  %s1091_s1 = smov 64  }
 0x1ce   :  { %v875_v20 = vsel %vm449_vm2, 1.0, %v1089_v42  ;;  %1033 = vmatprep.subr.mxu0 %v38_v32  ;;  %1053 = vmatprep.subr.mxu1 %v38_v32 }
 0x1cf   :  { %v454_v21 = vsel %vm449_vm2, 0.0, %v453_v17  ;;  %1030 = vmatprep.mubr.msk.f32.mxu1 %vm275_vm1, %v875_v20  ;;  %v452_v25 = vadd.f32 %v875_v20, %v445_v22  ;;  %1034 = vmatpush3.msra.mxu0 %v38_v32 }
 0x1d0   :  { %v455_v23 = vadd.f32 %v454_v21, %v402_v19  ;;  %1057 = vmatpush3.msra.mxu1 %v38_v32  ;;  %1035 = vmatprep.subr.mxu0 %v37_v33 }
 0x1d1   :  { %1054 = vmatprep.subr.mxu1 %v37_v33  ;;  %1036 = vmatpush3.msra.mxu0 %v37_v33 }
 0x1d2   :  { %vm456_vm3 = vcmp.gt.f32.partialorder %v455_v23, %v1277_v39  ;;  %1058 = vmatpush3.msra.mxu1 %v37_v33  ;;  %1037 = vmatprep.subr.mxu0 %v36_v34  ;;  %v72_v39 = vsub.s32 2, %v1198_v26 }
 0x1d3   :  { %v876_v27 = vsel %vm456_vm3, 1.0, %v1089_v42  ;;  %1055 = vmatprep.subr.mxu1 %v36_v34  ;;  %1038 = vmatpush3.msra.mxu0 %v36_v34 }
 0x1d4   :  { %1031 = vmatmul.mubr.msk.f32.gmra.mxu1 %vm275_vm1, %v876_v27  ;;  %v459_v29 = vadd.f32 %v876_v27, %v452_v25  ;;  %1039 = vmatprep.subr.mxu0 %v35_v35  ;;  %v463_v44 = vrot.slane %v1204_v28, %v72_v39 }
 0x1d5   :  { %1059 = vmatpush3.msra.mxu1 %v36_v34  ;;  %1040 = vmatpush3.msra.mxu0 %v35_v35 }
 0x1d6   :  { %v806_v30 = vmul.f32 0.125, %v459_v29  ;;  %1056 = vmatprep.subr.mxu1 %v35_v35 }
 0x1d7   :  { %1060 = vmatpush3.msra.mxu1 %v35_v35 }
 0x1d8   :  { %809 = vrot.lane.b32.xlu0 %v806_v30, %s1090_s15 }
 0x24a   :  { %v810_v41 = vpop.permute.xlu0 %809 }
 0x276   :  { %v1023_v43 = vpop.f32.mrf.mxu1 }
 0x277   :  { %v560_v51 = vadd.f32 %v1023_v43, %v463_v44  ;;  %v805_v43 = vmul.f32 0.125, %v1256_v24 }
 0x278   :  { %v554_v46 = vpop.f32.mrf.mxu1 }
 0x279   :  { %v555_v47 = vadd.f32 %v554_v46, %v463_v44 }
 0x27b   :  { %v594_v49 = vadd.f32 %v593_v45, %v555_v47 }
 0x27d   :  { %v599_v50 = vmul.f32 %v594_v49, %v69_v40  ;;  %vm595_vm4 = vcmp.gt.f32.partialorder %v594_v49, %v1329_v48 }
 0x27e   :  { %v885_v52 = vsel %vm595_vm4, 1.0, %v1089_v42 }
 0x27f   :  { %v600_v53 = vsel %vm595_vm4, 0.0, %v599_v50  ;;  %1041 = vmatprep.mubr.msk.f32.mxu0 %vm275_vm1, %v885_v52 }
 0x280   :  { %v601_v54 = vadd.f32 %v600_v53, %v560_v51  ;;  %v1026_v55 = vpop.f32.mrf.mxu1 }
 0x281   :  { %v570_v62 = vadd.f32 %v1026_v55, %v463_v44 }
 0x282   :  { %vm602_vm5 = vcmp.gt.f32.partialorder %v601_v54, %v1329_v48  ;;  %v564_v56 = vpop.f32.mrf.mxu1  ;;  %v606_v57 = vmul.f32 %v601_v54, %v69_v40 }
 0x283   :  { %v886_v58 = vsel %vm602_vm5, 1.0, %v1089_v42  ;;  %v565_v31 = vadd.f32 %v564_v56, %v463_v44 }
 0x284   :  { %v607_v59 = vsel %vm602_vm5, 0.0, %v606_v57  ;;  %1042 = vmatmul.mubr.msk.f32.vlgmr.msra.gmra.mxu0 %vm275_vm1, %v886_v58  ;;  %v605_v15 = vadd.f32 %v886_v58, %v885_v52 }
 0x285   :  { %v608_v60 = vadd.f32 %v607_v59, %v565_v31 }
 0x287   :  { %v613_v61 = vmul.f32 %v608_v60, %v69_v40  ;;  %vm609_vm6 = vcmp.gt.f32.partialorder %v608_v60, %v1329_v48 }
 0x288   :  { %v887_v63 = vsel %vm609_vm6, 1.0, %v1089_v42 }
 0x289   :  { %v614_v0 = vsel %vm609_vm6, 0.0, %v613_v61  ;;  %1044 = vmatprep.mubr.msk.f32.mxu0 %vm275_vm1, %v887_v63  ;;  %v612_v20 = vadd.f32 %v887_v63, %v605_v15 }
 0x28a   :  { %v1029_v1 = vpop.f32.mrf.mxu1  ;;  %v615_v2 = vadd.f32 %v614_v0, %v570_v62 }
 0x28b   :  { %v580_v10 = vadd.f32 %v1029_v1, %v463_v44 }
 0x28c   :  { %v574_v3 = vpop.f32.mrf.mxu1  ;;  %vm616_vm7 = vcmp.gt.f32.partialorder %v615_v2, %v1329_v48  ;;  %v620_v4 = vmul.f32 %v615_v2, %v69_v40 }
 0x28d   :  { %v575_v5 = vadd.f32 %v574_v3, %v463_v44  ;;  %v888_v6 = vsel %vm616_vm7, 1.0, %v1089_v42 }
 0x28e   :  { %v621_v7 = vsel %vm616_vm7, 0.0, %v620_v4  ;;  %1045 = vmatmul.mubr.msk.f32.gmra.mxu0 %vm275_vm1, %v888_v6  ;;  %v619_v23 = vadd.f32 %v888_v6, %v612_v20 }
 0x28f   :  { %v622_v8 = vadd.f32 %v621_v7, %v575_v5 }
 0x291   :  { %v627_v9 = vmul.f32 %v622_v8, %v69_v40  ;;  %vm623_vm8 = vcmp.gt.f32.partialorder %v622_v8, %v1329_v48 }
 0x292   :  { %v889_v11 = vsel %vm623_vm8, 1.0, %v1089_v42 }
 0x293   :  { %v628_v12 = vsel %vm623_vm8, 0.0, %v627_v9  ;;  %1047 = vmatprep.mubr.msk.f32.mxu1 %vm275_vm1, %v889_v11  ;;  %v626_v27 = vadd.f32 %v889_v11, %v619_v23 }
 0x294   :  { %v1032_v13 = vpop.f32.mrf.mxu1  ;;  %v629_v14 = vadd.f32 %v628_v12, %v580_v10 }
 0x295   :  { %v590_v29 = vadd.f32 %v1032_v13, %v463_v44 }
 0x296   :  { %v584_v16 = vpop.f32.mrf.mxu1  ;;  %vm630_vm9 = vcmp.gt.f32.partialorder %v629_v14, %v1329_v48  ;;  %v634_v17 = vmul.f32 %v629_v14, %v69_v40 }
 0x297   :  { %v585_v18 = vadd.f32 %v584_v16, %v463_v44  ;;  %v890_v19 = vsel %vm630_vm9, 1.0, %v1089_v42  ;;  %v816_v44 = vsel %vm275_vm1, %v805_v43, %v810_v41 }
 0x298   :  { %v635_v21 = vsel %vm630_vm9, 0.0, %v634_v17  ;;  %1048 = vmatmul.mubr.msk.f32.vlgmr.msra.gmra.mxu1 %vm275_vm1, %v890_v19  ;;  %v633_v33 = vadd.f32 %v890_v19, %v626_v27 }
 0x299   :  { %v636_v22 = vadd.f32 %v635_v21, %v585_v18 }
 0x29b   :  { %v641_v25 = vmul.f32 %v636_v22, %v69_v40  ;;  %vm637_vm10 = vcmp.gt.f32.partialorder %v636_v22, %v1329_v48 }
 0x29c   :  { %v891_v30 = vsel %vm637_vm10, 1.0, %v1089_v42 }
 0x29d   :  { %v642_v32 = vsel %vm637_vm10, 0.0, %v641_v25  ;;  %1050 = vmatprep.mubr.msk.f32.mxu1 %vm275_vm1, %v891_v30  ;;  %v640_v35 = vadd.f32 %v891_v30, %v633_v33 }
 0x29e   :  { %v643_v34 = vadd.f32 %v642_v32, %v590_v29 }
 0x2a0   :  { %vm644_vm11 = vcmp.gt.f32.partialorder %v643_v34, %v1329_v48  ;;  %v650_v48 = vsub.s32 3, %v1198_v26 }
 0x2a1   :  { %v892_v37 = vsel %vm644_vm11, 1.0, %v1089_v42  ;;  %v73_v42 = vrot.slane %v1318_v36, %v72_v39 }
 0x2a2   :  { %1051 = vmatmul.mubr.msk.f32.gmra.mxu1 %vm275_vm1, %v892_v37  ;;  %v647_v38 = vadd.f32 %v892_v37, %v640_v35  ;;  %v651_v50 = vrot.slane %v1204_v28, %v650_v48 }
 0x2a3   :  { %v781_v51 = vmul.f32 0.0, %v73_v42 }
 0x2a4   :  { %v807_v40 = vmul.f32 0.125, %v647_v38 }
 0x2a6   :  { %813 = vrot.lane.b32.xlu0 %v807_v40, %s1091_s1 }
 0x318   :  { %v814_v45 = vpop.permute.xlu0 %813 }
 0x319   :  { %v818_v46 = vsel %vm817_vm12, %v816_v44, %v814_v45 }
 0x31a   :  { %v819_v47 = vsel %vm86_vm0, %v818_v46, 0.0 }
 0x31b   :  { %828 = vst [vmem:[#allocation2 + $0x40] sm:$0xff] %v819_v47 }
 0x344   :  { %v1043_v49 = vpop.f32.mrf.mxu0 }
 0x345   :  { %v748_v54 = vadd.f32 %v1043_v49, %v651_v50 }
 0x346   :  { %v742_v52 = vpop.f32.mrf.mxu0 }
 0x347   :  { %v743_v24 = vadd.f32 %v742_v52, %v651_v50 }
 0x349   :  { %v782_v53 = vadd.f32 %v781_v51, %v743_v24 }
 0x34b   :  { %v783_v55 = vmul.f32 %v782_v53, %v73_v42  ;;  %v797_v56 = vsel %vm275_vm1, %v782_v53, 0.0 }
 0x34c   :  { %820 = vst [vmem:[#allocation2] sm:$0xff] %v797_v56 }
 0x34d   :  { %v784_v57 = vadd.f32 %v783_v55, %v748_v54 }
 0x34e   :  { %v1046_v58 = vpop.f32.mrf.mxu0 }
 0x34f   :  { %v798_v31 = vsel %vm275_vm1, %v784_v57, 0.0  ;;  %v785_v36 = vmul.f32 %v784_v57, %v73_v42  ;;  %v758_v60 = vadd.f32 %v1046_v58, %v651_v50 }
 0x350   :  { %v752_v59 = vpop.f32.mrf.mxu0  ;;  %821 = vst [vmem:[#allocation2 + $0x8] sm:$0xff] %v798_v31 }
 0x351   :  { %v753_v26 = vadd.f32 %v752_v59, %v651_v50 }
 0x353   :  { %v786_v39 = vadd.f32 %v785_v36, %v753_v26 }
 0x355   :  { %v787_v28 = vmul.f32 %v786_v39, %v73_v42  ;;  %v799_v61 = vsel %vm275_vm1, %v786_v39, 0.0 }
 0x356   :  { %822 = vst [vmem:[#allocation2 + $0x10] sm:$0xff] %v799_v61 }
 0x357   :  { %v788_v62 = vadd.f32 %v787_v28, %v758_v60 }
 0x358   :  { %v1049_v63 = vpop.f32.mrf.mxu1 }
 0x359   :  { %v800_v0 = vsel %vm275_vm1, %v788_v62, 0.0  ;;  %v789_v3 = vmul.f32 %v788_v62, %v73_v42  ;;  %v768_v5 = vadd.f32 %v1049_v63, %v651_v50 }
 0x35a   :  { %v762_v1 = vpop.f32.mrf.mxu1  ;;  %823 = vst [vmem:[#allocation2 + $0x18] sm:$0xff] %v800_v0 }
 0x35b   :  { %v763_v2 = vadd.f32 %v762_v1, %v651_v50 }
 0x35d   :  { %v790_v4 = vadd.f32 %v789_v3, %v763_v2 }
 0x35f   :  { %v791_v6 = vmul.f32 %v790_v4, %v73_v42  ;;  %v801_v7 = vsel %vm275_vm1, %v790_v4, 0.0 }
 0x360   :  { %824 = vst [vmem:[#allocation2 + $0x20] sm:$0xff] %v801_v7 }
 0x361   :  { %v792_v8 = vadd.f32 %v791_v6, %v768_v5 }
 0x362   :  { %v1052_v9 = vpop.f32.mrf.mxu1 }
 0x363   :  { %v802_v10 = vsel %vm275_vm1, %v792_v8, 0.0  ;;  %v793_v13 = vmul.f32 %v792_v8, %v73_v42  ;;  %v778_v15 = vadd.f32 %v1052_v9, %v651_v50 }
 0x364   :  { %v772_v11 = vpop.f32.mrf.mxu1  ;;  %825 = vst [vmem:[#allocation2 + $0x28] sm:$0xff] %v802_v10 }
 0x365   :  { %v773_v12 = vadd.f32 %v772_v11, %v651_v50 }
 0x367   :  { %v794_v14 = vadd.f32 %v793_v13, %v773_v12 }
 0x369   :  { %v795_v16 = vmul.f32 %v794_v14, %v73_v42  ;;  %v803_v17 = vsel %vm275_vm1, %v794_v14, 0.0 }
 0x36a   :  { %826 = vst [vmem:[#allocation2 + $0x30] sm:$0xff] %v803_v17 }
 0x36b   :  { %v796_v18 = vadd.f32 %v795_v16, %v778_v15 }
 0x36d   :  { %v804_v19 = vsel %vm275_vm1, %v796_v18, 0.0 }
 0x36e   :  { %827 = vst [vmem:[#allocation2 + $0x38] sm:$0xff] %v804_v19 }
 0x36f   :  { %1078 = shalt.err (!%p1075_p4)
}
 0x370   :  { %s1093_s28 = smov 128   ;;  %s1094_s29 = smov 8  }
 0x371   :  { %840 = dma.vmem_to_hbm [thread:$0]  %s835_s26, 1152, %s1377_s3, [#allocation3], %s1093_s28, %s1093_s28, %s1094_s29  }
 0x372   :  { %1087 = dma.done.wait [#allocation3], 1152  }
 0x373   :  { %1088 = vsyncadd [#allocation3], 4294966144 }
 0x374   :  { %844 = vsyncpa [#allocation3], 1 }

</bundles_post_ra>
